<compile_context>
chip_gen: v7x
topology: tpu7x:2x2x1
jax: 0.10.0
libtpu: 0.0.40
codegen_flags: <defaults>
</compile_context>

<pallas_src>
import math
import functools

import jax
import jax.numpy as jnp
from jax.experimental import pallas as pl
from jax.experimental.pallas import tpu as pltpu


def _bert_attention_kernel(*refs, num_heads, head_size, fused):
    if fused:
        (x_ref, c_ref, mask_ref, w_ref, b_ref, out_ref, probs_ref) = refs
    else:
        (x_ref, c_ref, mask_ref, wq_ref, bq_ref, wkv_ref, bkv_ref,
         out_ref, probs_ref) = refs

    B, Sq, H = x_ref.shape
    _, Sk, Hc = c_ref.shape
    A = num_heads * head_size
    inv_sqrt_d = 1.0 / math.sqrt(head_size)

    # Fold batch into the matmul M dimension (lane axis untouched; the
    # second-minor dims are multiples of 8 so the reshape is a no-op relayout).
    x2 = x_ref[...].reshape(B * Sq, H)        # (B*Sq, H)
    c2 = c_ref[...].reshape(B * Sk, Hc)       # (B*Sk, Hc)

    if fused:
        # One MXU dispatch for all three projections (H == Hc). The wasted
        # cross terms (x @ [Wk|Wv], c @ Wq) are discarded by the slices below;
        # merged, the whole thing is still a fraction of a single MXU pass.
        lhs = jnp.concatenate([x2, c2], axis=0)              # (B*(Sq+Sk), H)
        proj = jnp.dot(lhs, w_ref[...],
                       preferred_element_type=jnp.float32) + b_ref[0]
        q2 = proj[:B * Sq, :A] * inv_sqrt_d                  # (B*Sq, A)
        kv2 = proj[B * Sq:, A:]                              # (B*Sk, 2A)=[K|V]
    else:
        q2 = (jnp.dot(x2, wq_ref[...],
                      preferred_element_type=jnp.float32)
              + bq_ref[0]) * inv_sqrt_d
        kv2 = jnp.dot(c2, wkv_ref[...],
                      preferred_element_type=jnp.float32) + bkv_ref[0]

    q = q2.reshape(B, Sq, A)
    k = kv2[:, :A].reshape(B, Sk, A)
    v = kv2[:, A:].reshape(B, Sk, A)

    mask = mask_ref[...]                      # (B, Sq, Sk), bcast over heads

    # Statically-unrolled per-head loop over lane slices of the hidden axis
    # (avoids splitting the lane axis into a head_size-minor dimension). Each
    # head stores its probs / context slab directly into the output refs.
    # TODO(synk): on v5e, if the epilogue shows vst saturation, present probs
    # lane-dense as (B, nH, Sq*Sk) to the out_spec and reshape in the wrapper.
    for n in range(num_heads):
        sl = slice(n * head_size, (n + 1) * head_size)
        qh, kh, vh = q[:, :, sl], k[:, :, sl], v[:, :, sl]

        # attention_scores = (Q/sqrt(d)) K^T + mask : (B, Sq, Sk)
        s = jnp.einsum('bqd,bkd->bqk', qh, kh,
                       preferred_element_type=jnp.float32) + mask

        # Numerically-stable softmax over the key axis (exact division so the
        # returned attention_probs rows sum to 1).
        m = jnp.max(s, axis=-1, keepdims=True)
        e = jnp.exp(s - m)
        denom = jnp.sum(e, axis=-1, keepdims=True)
        p = e / denom

        # TODO(synk): nn.Dropout on attention_probs is stochastic (train mode);
        # eval-mode (identity) semantics are implemented here.
        probs_ref[:, n:n + 1, :, :] = p[:, None, :, :].astype(probs_ref.dtype)
        out_ref[:, :, sl] = jnp.einsum(
            'bqk,bkd->bqd', p, vh,
            preferred_element_type=jnp.float32).astype(out_ref.dtype)


def fuse_bert_attention_params(params):
    """One-time (init-time) weight/bias fusion — kept OUT of the per-call path."""
    H = params['wq'].shape[0]
    Hc = params['wk'].shape[0]
    if H == Hc:
        return {
            'fused': True,
            'w_qkv': jnp.concatenate(
                [params['wq'], params['wk'], params['wv']], axis=1),   # (H, 3A)
            'b_qkv': jnp.concatenate(
                [params['bq'], params['bk'], params['bv']], axis=1),   # (1, 3A)
        }
    return {
        'fused': False,
        'wq': params['wq'], 'bq': params['bq'],
        'wkv': jnp.concatenate([params['wk'], params['wv']], axis=1),  # (Hc, 2A)
        'bkv': jnp.concatenate([params['bk'], params['bv']], axis=1),  # (1, 2A)
    }


def bert_attention(hidden_states, context, attention_mask, fused_params, *, num_heads):
    B, Sq, H = hidden_states.shape
    _, Sk, Hc = context.shape
    fused = fused_params['fused']
    all_head = (fused_params['w_qkv'].shape[1] // 3 if fused
                else fused_params['wq'].shape[1])
    head_size = all_head // num_heads

    kernel = functools.partial(_bert_attention_kernel, num_heads=num_heads,
                               head_size=head_size, fused=fused)

    if fused:
        weight_args = (fused_params['w_qkv'], fused_params['b_qkv'])
        proj_flops = 2 * B * (Sq + Sk) * H * 3 * all_head
    else:
        weight_args = (fused_params['wq'], fused_params['bq'],
                       fused_params['wkv'], fused_params['bkv'])
        proj_flops = (2 * B * Sq * H * all_head
                      + 2 * B * Sk * Hc * 2 * all_head)

    # Advisory cost estimate for XLA's scheduler.
    flops = (proj_flops
             + 2 * B * num_heads * Sq * Sk * head_size    # Q K^T
             + 2 * B * num_heads * Sq * Sk * head_size)   # probs @ V
    transcendentals = B * num_heads * Sq * Sk             # exp in softmax
    bytes_accessed = 4 * (hidden_states.size + context.size
                          + attention_mask.size
                          + sum(w.size for w in weight_args)
                          + B * Sq * all_head
                          + B * num_heads * Sq * Sk)

    vmem = pl.BlockSpec(memory_space=pltpu.MemorySpace.VMEM)
    args = (hidden_states, context, attention_mask) + weight_args

    # Grid-less call: the whole problem runs as a single kernel invocation
    # (everything fits comfortably in VMEM at these sizes; a grid would only
    # add per-step bookkeeping).
    # TODO(synk): for production BERT shapes, tile over (head, q-block) with Sk
    # as the trailing "arbitrary" reduction axis (flash-style online softmax),
    # mark the leading axes "parallel" so v7x's two TensorCores both work, set
    # vmem_limit_bytes against v7x's 64 MiB VMEM, and avoid materializing the
    # full (B, nH, Sq, Sk) probs tensor.
    out_ctx, out_probs = pl.pallas_call(
        kernel,
        out_shape=(
            jax.ShapeDtypeStruct((B, Sq, all_head), hidden_states.dtype),
            jax.ShapeDtypeStruct((B, num_heads, Sq, Sk), jnp.float32),
        ),
        in_specs=[vmem] * len(args),
        out_specs=(vmem, vmem),
        cost_estimate=pl.CostEstimate(flops=flops,
                                      transcendentals=transcendentals,
                                      bytes_accessed=bytes_accessed),
    )(*args)
    return out_ctx, out_probs


def reference_bert_attention(hidden_states, context, attention_mask, params,
                             *, num_heads):
    """Pure-JAX reference mirroring the PyTorch forward (eval-mode dropout)."""
    B, Sq, H = hidden_states.shape
    _, Sk, _ = context.shape
    all_head = params['wq'].shape[1]
    head_size = all_head // num_heads
    hp = jax.lax.Precision.HIGHEST

    q = jnp.dot(hidden_states, params['wq'], precision=hp) + params['bq'][0]
    k = jnp.dot(context, params['wk'], precision=hp) + params['bk'][0]
    v = jnp.dot(context, params['wv'], precision=hp) + params['bv'][0]

    def split(x, s):
        return x.reshape(B, s, num_heads, head_size).transpose(0, 2, 1, 3)

    q, k, v = split(q, Sq), split(k, Sk), split(v, Sk)
    scores = jnp.einsum('bnqd,bnkd->bnqk', q, k,
                        precision=hp) / math.sqrt(head_size)
    scores = scores + attention_mask[:, None, :, :]
    probs = jax.nn.softmax(scores, axis=-1)
    ctx = jnp.einsum('bnqk,bnkd->bnqd', probs, v, precision=hp)
    ctx = ctx.transpose(0, 2, 1, 3).reshape(B, Sq, all_head)
    return ctx, probs


if __name__ == "__main__":
    # Config (mirrors config['Architecture'] / config['Train']).
    hidden_size = 32
    num_attention_heads = 4
    ctx_dim = 32
    B, Sq, Sk = 2, 8, 16

    key = jax.random.PRNGKey(0)
    ks = jax.random.split(key, 9)

    hidden_states = jax.random.normal(ks[0], (B, Sq, hidden_size), jnp.float32)
    context = jax.random.normal(ks[1], (B, Sk, ctx_dim), jnp.float32)

    # Additive attention mask: mask out the last 4 key positions of batch 1.
    mask = jnp.zeros((B, Sq, Sk), jnp.float32)
    mask = mask.at[1, :, Sk - 4:].set(-10000.0)

    scale = 0.02
    params = {
        'wq': scale * jax.random.normal(ks[2], (hidden_size, hidden_size), jnp.float32),
        'bq': scale * jax.random.normal(ks[3], (1, hidden_size), jnp.float32),
        'wk': scale * jax.random.normal(ks[4], (ctx_dim, hidden_size), jnp.float32),
        'bk': scale * jax.random.normal(ks[5], (1, hidden_size), jnp.float32),
        'wv': scale * jax.random.normal(ks[6], (ctx_dim, hidden_size), jnp.float32),
        'bv': scale * jax.random.normal(ks[7], (1, hidden_size), jnp.float32),
    }

    # Weight fusion done ONCE, outside the per-call path.
    fused_params = fuse_bert_attention_params(params)
    jax.block_until_ready(fused_params)

    ctx_out, probs_out = bert_attention(
        hidden_states, context, mask, fused_params, num_heads=num_attention_heads)
    jax.block_until_ready((ctx_out, probs_out))

    ctx_ref, probs_ref = reference_bert_attention(
        hidden_states, context, mask, params, num_heads=num_attention_heads)

    assert ctx_out.shape == (B, Sq, hidden_size)
    assert probs_out.shape == (B, num_attention_heads, Sq, Sk)
    # Exact softmax reciprocal now used, so tolerance is back near f32 level
    # (small slack for MXU multi-pass f32 vs XLA HIGHEST-precision reference).
    assert jnp.allclose(ctx_out, ctx_ref, atol=1e-4, rtol=1e-4)
    assert jnp.allclose(probs_out, probs_ref, atol=1e-4, rtol=1e-4)

    print("KERNEL_OK")
</pallas_src>

<mosaic_0001>
module attributes {stable_mosaic.version = 11 : i64} {
  func.func @_bert_attention_kernel(%arg0: memref<2x8x32xf32, #tpu.memory_space<vmem>>, %arg1: memref<2x16x32xf32, #tpu.memory_space<vmem>>, %arg2: memref<2x8x16xf32, #tpu.memory_space<vmem>>, %arg3: memref<32x96xf32, #tpu.memory_space<vmem>>, %arg4: memref<1x96xf32, #tpu.memory_space<vmem>>, %arg5: memref<2x8x32xf32, #tpu.memory_space<vmem>>, %arg6: memref<2x4x8x16xf32, #tpu.memory_space<vmem>>) attributes {dimension_semantics = [], scalar_prefetch = 0 : i64, scratch_operands = 0 : i64, tpu.core_type = #tpu.core_type<tc>} {
    %c0 = arith.constant 0 : index
    %c0_0 = arith.constant 0 : index
    %c0_1 = arith.constant 0 : index
    %0 = vector.load %arg0[%c0, %c0_0, %c0_1] : memref<2x8x32xf32, #tpu.memory_space<vmem>>, vector<2x8x32xf32>
    %1 = vector.shape_cast %0 : vector<2x8x32xf32> to vector<16x32xf32>
    %c0_2 = arith.constant 0 : index
    %c0_3 = arith.constant 0 : index
    %c0_4 = arith.constant 0 : index
    %2 = vector.load %arg1[%c0_2, %c0_3, %c0_4] : memref<2x16x32xf32, #tpu.memory_space<vmem>>, vector<2x16x32xf32>
    %3 = vector.shape_cast %2 : vector<2x16x32xf32> to vector<32x32xf32>
    %4 = tpu.concatenate %1, %3 in 0 : vector<16x32xf32>, vector<32x32xf32> -> vector<48x32xf32>
    %c0_5 = arith.constant 0 : index
    %c0_6 = arith.constant 0 : index
    %5 = vector.load %arg3[%c0_5, %c0_6] : memref<32x96xf32, #tpu.memory_space<vmem>>, vector<32x96xf32>
    %cst = arith.constant dense<0.000000e+00> : vector<48x96xf32>
    %6 = tpu.matmul %4, %5, %cst {dimension_numbers = #tpu.dot_dimension_numbers<[1], [0], [0], [1], [0, 0, 1, 1], [], []>} : vector<48x32xf32>, vector<32x96xf32>, vector<48x96xf32> -> vector<48x96xf32>
    %c0_7 = arith.constant 0 : index
    %c0_8 = arith.constant 0 : index
    %7 = vector.load %arg4[%c0_7, %c0_8] : memref<1x96xf32, #tpu.memory_space<vmem>>, vector<1x96xf32>
    %8 = vector.shape_cast %7 : vector<1x96xf32> to vector<96xf32>
    %9 = vector.shape_cast %8 : vector<96xf32> to vector<1x96xf32>
    %10 = vector.broadcast %9 : vector<1x96xf32> to vector<48x96xf32>
    %11 = arith.addf %6, %10 : vector<48x96xf32>
    %12 = vector.extract_strided_slice %11 {offsets = [0, 0], sizes = [16, 32], strides = [1, 1]} : vector<48x96xf32> to vector<16x32xf32>
    %cst_9 = arith.constant 0.353553385 : f32
    %13 = vector.broadcast %cst_9 : f32 to vector<16x32xf32>
    %14 = arith.mulf %12, %13 : vector<16x32xf32>
    %15 = vector.extract_strided_slice %11 {offsets = [16, 32], sizes = [32, 64], strides = [1, 1]} : vector<48x96xf32> to vector<32x64xf32>
    %16 = vector.shape_cast %14 : vector<16x32xf32> to vector<2x8x32xf32>
    %17 = vector.extract_strided_slice %15 {offsets = [0, 0], sizes = [32, 32], strides = [1, 1]} : vector<32x64xf32> to vector<32x32xf32>
    %18 = vector.shape_cast %17 : vector<32x32xf32> to vector<2x16x32xf32>
    %19 = vector.extract_strided_slice %15 {offsets = [0, 32], sizes = [32, 32], strides = [1, 1]} : vector<32x64xf32> to vector<32x32xf32>
    %20 = vector.shape_cast %19 : vector<32x32xf32> to vector<2x16x32xf32>
    %c0_10 = arith.constant 0 : index
    %c0_11 = arith.constant 0 : index
    %c0_12 = arith.constant 0 : index
    %21 = vector.load %arg2[%c0_10, %c0_11, %c0_12] : memref<2x8x16xf32, #tpu.memory_space<vmem>>, vector<2x8x16xf32>
    %22 = vector.extract_strided_slice %16 {offsets = [0, 0, 0], sizes = [2, 8, 8], strides = [1, 1, 1]} : vector<2x8x32xf32> to vector<2x8x8xf32>
    %23 = vector.extract_strided_slice %18 {offsets = [0, 0, 0], sizes = [2, 16, 8], strides = [1, 1, 1]} : vector<2x16x32xf32> to vector<2x16x8xf32>
    %24 = vector.extract_strided_slice %20 {offsets = [0, 0, 0], sizes = [2, 16, 8], strides = [1, 1, 1]} : vector<2x16x32xf32> to vector<2x16x8xf32>
    "tpu.trace_start"() <{level = 10 : i32, message = "bqd,bkd->bqk"}> : () -> ()
    %cst_13 = arith.constant dense<0.000000e+00> : vector<2x8x16xf32>
    %25 = tpu.matmul %22, %23, %cst_13 {dimension_numbers = #tpu.dot_dimension_numbers<[2], [2], [1], [1], [0, 0, 0, 1, 1, 1], [0], [0]>} : vector<2x8x8xf32>, vector<2x16x8xf32>, vector<2x8x16xf32> -> vector<2x8x16xf32>
    "tpu.trace_stop"() : () -> ()
    %26 = arith.addf %25, %21 : vector<2x8x16xf32>
    %cst_14 = arith.constant dense<0xFF800000> : vector<2x8xf32>
    %27 = vector.multi_reduction <maximumf>, %26, %cst_14 [2] : vector<2x8x16xf32> to vector<2x8xf32>
    %28 = vector.shape_cast %27 : vector<2x8xf32> to vector<2x8x1xf32>
    %29 = vector.broadcast %28 : vector<2x8x1xf32> to vector<2x8x16xf32>
    %30 = arith.subf %26, %29 : vector<2x8x16xf32>
    %31 = math.exp %30 : vector<2x8x16xf32>
    %cst_15 = arith.constant dense<0.000000e+00> : vector<2x8xf32>
    %32 = vector.multi_reduction <add>, %31, %cst_15 [2] : vector<2x8x16xf32> to vector<2x8xf32>
    %33 = vector.shape_cast %32 : vector<2x8xf32> to vector<2x8x1xf32>
    %34 = vector.broadcast %33 : vector<2x8x1xf32> to vector<2x8x16xf32>
    %35 = arith.divf %31, %34 : vector<2x8x16xf32>
    %36 = vector.shape_cast %35 : vector<2x8x16xf32> to vector<2x1x8x16xf32>
    %c0_16 = arith.constant 0 : index
    %c0_17 = arith.constant 0 : index
    %c0_18 = arith.constant 0 : index
    %c0_19 = arith.constant 0 : index
    %37 = vector.load %arg6[%c0_16, %c0_17, %c0_18, %c0_19] : memref<2x4x8x16xf32, #tpu.memory_space<vmem>>, vector<2x1x8x16xf32>
    tpu.vector_store %arg6[%c0_16, %c0_17, %c0_18, %c0_19], %36 {strides = array<i32>} : memref<2x4x8x16xf32, #tpu.memory_space<vmem>>, vector<2x1x8x16xf32>,
    "tpu.trace_start"() <{level = 10 : i32, message = "bqk,bkd->bqd"}> : () -> ()
    %cst_20 = arith.constant dense<0.000000e+00> : vector<2x8x8xf32>
    %38 = tpu.matmul %35, %24, %cst_20 {dimension_numbers = #tpu.dot_dimension_numbers<[2], [1], [1], [2], [0, 0, 0, 1, 1, 2], [0], [0]>} : vector<2x8x16xf32>, vector<2x16x8xf32>, vector<2x8x8xf32> -> vector<2x8x8xf32>
    "tpu.trace_stop"() : () -> ()
    %c0_21 = arith.constant 0 : index
    %c0_22 = arith.constant 0 : index
    %c0_23 = arith.constant 0 : index
    %39 = vector.load %arg5[%c0_21, %c0_22, %c0_23] : memref<2x8x32xf32, #tpu.memory_space<vmem>>, vector<2x8x8xf32>
    tpu.vector_store %arg5[%c0_21, %c0_22, %c0_23], %38 {strides = array<i32>} : memref<2x8x32xf32, #tpu.memory_space<vmem>>, vector<2x8x8xf32>,
    %40 = vector.extract_strided_slice %16 {offsets = [0, 0, 8], sizes = [2, 8, 8], strides = [1, 1, 1]} : vector<2x8x32xf32> to vector<2x8x8xf32>
    %41 = vector.extract_strided_slice %18 {offsets = [0, 0, 8], sizes = [2, 16, 8], strides = [1, 1, 1]} : vector<2x16x32xf32> to vector<2x16x8xf32>
    %42 = vector.extract_strided_slice %20 {offsets = [0, 0, 8], sizes = [2, 16, 8], strides = [1, 1, 1]} : vector<2x16x32xf32> to vector<2x16x8xf32>
    "tpu.trace_start"() <{level = 10 : i32, message = "bqd,bkd->bqk"}> : () -> ()
    %cst_24 = arith.constant dense<0.000000e+00> : vector<2x8x16xf32>
    %43 = tpu.matmul %40, %41, %cst_24 {dimension_numbers = #tpu.dot_dimension_numbers<[2], [2], [1], [1], [0, 0, 0, 1, 1, 1], [0], [0]>} : vector<2x8x8xf32>, vector<2x16x8xf32>, vector<2x8x16xf32> -> vector<2x8x16xf32>
    "tpu.trace_stop"() : () -> ()
    %44 = arith.addf %43, %21 : vector<2x8x16xf32>
    %cst_25 = arith.constant dense<0xFF800000> : vector<2x8xf32>
    %45 = vector.multi_reduction <maximumf>, %44, %cst_25 [2] : vector<2x8x16xf32> to vector<2x8xf32>
    %46 = vector.shape_cast %45 : vector<2x8xf32> to vector<2x8x1xf32>
    %47 = vector.broadcast %46 : vector<2x8x1xf32> to vector<2x8x16xf32>
    %48 = arith.subf %44, %47 : vector<2x8x16xf32>
    %49 = math.exp %48 : vector<2x8x16xf32>
    %cst_26 = arith.constant dense<0.000000e+00> : vector<2x8xf32>
    %50 = vector.multi_reduction <add>, %49, %cst_26 [2] : vector<2x8x16xf32> to vector<2x8xf32>
    %51 = vector.shape_cast %50 : vector<2x8xf32> to vector<2x8x1xf32>
    %52 = vector.broadcast %51 : vector<2x8x1xf32> to vector<2x8x16xf32>
    %53 = arith.divf %49, %52 : vector<2x8x16xf32>
    %54 = vector.shape_cast %53 : vector<2x8x16xf32> to vector<2x1x8x16xf32>
    %c0_27 = arith.constant 0 : index
    %c1 = arith.constant 1 : index
    %c0_28 = arith.constant 0 : index
    %c0_29 = arith.constant 0 : index
    %55 = vector.load %arg6[%c0_27, %c1, %c0_28, %c0_29] : memref<2x4x8x16xf32, #tpu.memory_space<vmem>>, vector<2x1x8x16xf32>
    tpu.vector_store %arg6[%c0_27, %c1, %c0_28, %c0_29], %54 {strides = array<i32>} : memref<2x4x8x16xf32, #tpu.memory_space<vmem>>, vector<2x1x8x16xf32>,
    "tpu.trace_start"() <{level = 10 : i32, message = "bqk,bkd->bqd"}> : () -> ()
    %cst_30 = arith.constant dense<0.000000e+00> : vector<2x8x8xf32>
    %56 = tpu.matmul %53, %42, %cst_30 {dimension_numbers = #tpu.dot_dimension_numbers<[2], [1], [1], [2], [0, 0, 0, 1, 1, 2], [0], [0]>} : vector<2x8x16xf32>, vector<2x16x8xf32>, vector<2x8x8xf32> -> vector<2x8x8xf32>
    "tpu.trace_stop"() : () -> ()
    %c0_31 = arith.constant 0 : index
    %c0_32 = arith.constant 0 : index
    %c8 = arith.constant 8 : index
    %57 = vector.load %arg5[%c0_31, %c0_32, %c8] : memref<2x8x32xf32, #tpu.memory_space<vmem>>, vector<2x8x8xf32>
    tpu.vector_store %arg5[%c0_31, %c0_32, %c8], %56 {strides = array<i32>} : memref<2x8x32xf32, #tpu.memory_space<vmem>>, vector<2x8x8xf32>,
    %58 = vector.extract_strided_slice %16 {offsets = [0, 0, 16], sizes = [2, 8, 8], strides = [1, 1, 1]} : vector<2x8x32xf32> to vector<2x8x8xf32>
    %59 = vector.extract_strided_slice %18 {offsets = [0, 0, 16], sizes = [2, 16, 8], strides = [1, 1, 1]} : vector<2x16x32xf32> to vector<2x16x8xf32>
    %60 = vector.extract_strided_slice %20 {offsets = [0, 0, 16], sizes = [2, 16, 8], strides = [1, 1, 1]} : vector<2x16x32xf32> to vector<2x16x8xf32>
    "tpu.trace_start"() <{level = 10 : i32, message = "bqd,bkd->bqk"}> : () -> ()
    %cst_33 = arith.constant dense<0.000000e+00> : vector<2x8x16xf32>
    %61 = tpu.matmul %58, %59, %cst_33 {dimension_numbers = #tpu.dot_dimension_numbers<[2], [2], [1], [1], [0, 0, 0, 1, 1, 1], [0], [0]>} : vector<2x8x8xf32>, vector<2x16x8xf32>, vector<2x8x16xf32> -> vector<2x8x16xf32>
    "tpu.trace_stop"() : () -> ()
    %62 = arith.addf %61, %21 : vector<2x8x16xf32>
    %cst_34 = arith.constant dense<0xFF800000> : vector<2x8xf32>
    %63 = vector.multi_reduction <maximumf>, %62, %cst_34 [2] : vector<2x8x16xf32> to vector<2x8xf32>
    %64 = vector.shape_cast %63 : vector<2x8xf32> to vector<2x8x1xf32>
    %65 = vector.broadcast %64 : vector<2x8x1xf32> to vector<2x8x16xf32>
    %66 = arith.subf %62, %65 : vector<2x8x16xf32>
    %67 = math.exp %66 : vector<2x8x16xf32>
    %cst_35 = arith.constant dense<0.000000e+00> : vector<2x8xf32>
    %68 = vector.multi_reduction <add>, %67, %cst_35 [2] : vector<2x8x16xf32> to vector<2x8xf32>
    %69 = vector.shape_cast %68 : vector<2x8xf32> to vector<2x8x1xf32>
    %70 = vector.broadcast %69 : vector<2x8x1xf32> to vector<2x8x16xf32>
    %71 = arith.divf %67, %70 : vector<2x8x16xf32>
    %72 = vector.shape_cast %71 : vector<2x8x16xf32> to vector<2x1x8x16xf32>
    %c0_36 = arith.constant 0 : index
    %c2 = arith.constant 2 : index
    %c0_37 = arith.constant 0 : index
    %c0_38 = arith.constant 0 : index
    %73 = vector.load %arg6[%c0_36, %c2, %c0_37, %c0_38] : memref<2x4x8x16xf32, #tpu.memory_space<vmem>>, vector<2x1x8x16xf32>
    tpu.vector_store %arg6[%c0_36, %c2, %c0_37, %c0_38], %72 {strides = array<i32>} : memref<2x4x8x16xf32, #tpu.memory_space<vmem>>, vector<2x1x8x16xf32>,
    "tpu.trace_start"() <{level = 10 : i32, message = "bqk,bkd->bqd"}> : () -> ()
    %cst_39 = arith.constant dense<0.000000e+00> : vector<2x8x8xf32>
    %74 = tpu.matmul %71, %60, %cst_39 {dimension_numbers = #tpu.dot_dimension_numbers<[2], [1], [1], [2], [0, 0, 0, 1, 1, 2], [0], [0]>} : vector<2x8x16xf32>, vector<2x16x8xf32>, vector<2x8x8xf32> -> vector<2x8x8xf32>
    "tpu.trace_stop"() : () -> ()
    %c0_40 = arith.constant 0 : index
    %c0_41 = arith.constant 0 : index
    %c16 = arith.constant 16 : index
    %75 = vector.load %arg5[%c0_40, %c0_41, %c16] : memref<2x8x32xf32, #tpu.memory_space<vmem>>, vector<2x8x8xf32>
    tpu.vector_store %arg5[%c0_40, %c0_41, %c16], %74 {strides = array<i32>} : memref<2x8x32xf32, #tpu.memory_space<vmem>>, vector<2x8x8xf32>,
    %76 = vector.extract_strided_slice %16 {offsets = [0, 0, 24], sizes = [2, 8, 8], strides = [1, 1, 1]} : vector<2x8x32xf32> to vector<2x8x8xf32>
    %77 = vector.extract_strided_slice %18 {offsets = [0, 0, 24], sizes = [2, 16, 8], strides = [1, 1, 1]} : vector<2x16x32xf32> to vector<2x16x8xf32>
    %78 = vector.extract_strided_slice %20 {offsets = [0, 0, 24], sizes = [2, 16, 8], strides = [1, 1, 1]} : vector<2x16x32xf32> to vector<2x16x8xf32>
    "tpu.trace_start"() <{level = 10 : i32, message = "bqd,bkd->bqk"}> : () -> ()
    %cst_42 = arith.constant dense<0.000000e+00> : vector<2x8x16xf32>
    %79 = tpu.matmul %76, %77, %cst_42 {dimension_numbers = #tpu.dot_dimension_numbers<[2], [2], [1], [1], [0, 0, 0, 1, 1, 1], [0], [0]>} : vector<2x8x8xf32>, vector<2x16x8xf32>, vector<2x8x16xf32> -> vector<2x8x16xf32>
    "tpu.trace_stop"() : () -> ()
    %80 = arith.addf %79, %21 : vector<2x8x16xf32>
    %cst_43 = arith.constant dense<0xFF800000> : vector<2x8xf32>
    %81 = vector.multi_reduction <maximumf>, %80, %cst_43 [2] : vector<2x8x16xf32> to vector<2x8xf32>
    %82 = vector.shape_cast %81 : vector<2x8xf32> to vector<2x8x1xf32>
    %83 = vector.broadcast %82 : vector<2x8x1xf32> to vector<2x8x16xf32>
    %84 = arith.subf %80, %83 : vector<2x8x16xf32>
    %85 = math.exp %84 : vector<2x8x16xf32>
    %cst_44 = arith.constant dense<0.000000e+00> : vector<2x8xf32>
    %86 = vector.multi_reduction <add>, %85, %cst_44 [2] : vector<2x8x16xf32> to vector<2x8xf32>
    %87 = vector.shape_cast %86 : vector<2x8xf32> to vector<2x8x1xf32>
    %88 = vector.broadcast %87 : vector<2x8x1xf32> to vector<2x8x16xf32>
    %89 = arith.divf %85, %88 : vector<2x8x16xf32>
    %90 = vector.shape_cast %89 : vector<2x8x16xf32> to vector<2x1x8x16xf32>
    %c0_45 = arith.constant 0 : index
    %c3 = arith.constant 3 : index
    %c0_46 = arith.constant 0 : index
    %c0_47 = arith.constant 0 : index
    %91 = vector.load %arg6[%c0_45, %c3, %c0_46, %c0_47] : memref<2x4x8x16xf32, #tpu.memory_space<vmem>>, vector<2x1x8x16xf32>
    tpu.vector_store %arg6[%c0_45, %c3, %c0_46, %c0_47], %90 {strides = array<i32>} : memref<2x4x8x16xf32, #tpu.memory_space<vmem>>, vector<2x1x8x16xf32>,
    "tpu.trace_start"() <{level = 10 : i32, message = "bqk,bkd->bqd"}> : () -> ()
    %cst_48 = arith.constant dense<0.000000e+00> : vector<2x8x8xf32>
    %92 = tpu.matmul %89, %78, %cst_48 {dimension_numbers = #tpu.dot_dimension_numbers<[2], [1], [1], [2], [0, 0, 0, 1, 1, 2], [0], [0]>} : vector<2x8x16xf32>, vector<2x16x8xf32>, vector<2x8x8xf32> -> vector<2x8x8xf32>
    "tpu.trace_stop"() : () -> ()
    %c0_49 = arith.constant 0 : index
    %c0_50 = arith.constant 0 : index
    %c24 = arith.constant 24 : index
    %93 = vector.load %arg5[%c0_49, %c0_50, %c24] : memref<2x8x32xf32, #tpu.memory_space<vmem>>, vector<2x8x8xf32>
    tpu.vector_store %arg5[%c0_49, %c0_50, %c24], %92 {strides = array<i32>} : memref<2x8x32xf32, #tpu.memory_space<vmem>>, vector<2x8x8xf32>,
    return
  }
}

</mosaic_0001>

<bundles_post_ra>
// kernel: tpu_custom_call.1
= control target key start
LH: loop header
LB: loop body
LE: loop exit
PB: predicated region body
PF: predicated region fallthrough
CT: control target
= control target key end

     0   :  { %12 = vsyncpa [#allocation3], 0  ;;  %s2585_s0 = inlined_call_operand.hbm [shape: f32[2,8,32], index: 0, kind: input, shape index: {}]   ;;  %s2586_s1 = inlined_call_operand.hbm [shape: f32[2,16,32], index: 1, kind: input, shape index: {}]   ;;  %s2587_s2 = inlined_call_operand.hbm [shape: f32[2,8,16], index: 2, kind: input, shape index: {}]   ;;  %s2588_s3 = inlined_call_operand.hbm [shape: f32[32,96], index: 3, kind: input, shape index: {}]   ;;  %s2589_s4 = inlined_call_operand.vmem [shape: f32[1,96], index: 4, kind: input, shape index: {}]   ;;  %s2590_s5 = inlined_call_operand.hbm [shape: f32[2,8,32], index: 5, kind: output, shape index: {0}]   ;;  %s2591_s6 = inlined_call_operand.hbm [shape: f32[2,4,8,16], index: 6, kind: output, shape index: {1}]  }
   0x1   :  { %13 = vsyncpa [#allocation6], 0 }
   0x2   :  { %14 = vsyncpa [#allocation9], 0 }
   0x3   :  { %15 = vsyncpa [#allocation4], 0 }
   0x4   :  { %16 = vsyncpa [#allocation12], 0  ;;  %s2243_s21 = smov [#allocation5]   ;;  %s2244_s23 = smov [#allocation2]  }
   0x5   :  { %s34_s22 = sshll.u32 %s2243_s21, 4  ;;  %s22_s24 = sshll.u32 %s2244_s23, 4  ;;  %s35_s22 = int_to_ptr.vmem [resolvable:$true] %s34_s22  ;;  %s2302_s24 = int_to_ptr.vmem [resolvable:$true] %s22_s24 }
   0x6   :  { %s2101_s27 = scalar_lea.hbm %s2586_s1, 512 }
   0x7   :  { %p2102_p0 = scmp.ne.s32.totalorder %s2586_s1, %s2101_s27  ;;  %p2105_p1 = scmp.lt.u32.totalorder %s2101_s27, %s2586_s1 }
   0x9   :  { %p2107_p2 = pnand %p2105_p1, %p2102_p0 }
   0xb   :  { %2110 = shalt.err (!%p2107_p2)
}
   0xc   :  { %s2111_s8 = scalar_lea.vmem %s35_s22, 512  ;;  %p2116_p4 = scmp.lt.s32.totalorder %s35_s22, %s35_s22 }
   0xd   :  { %p2112_p3 = scmp.ne.s32.totalorder %s35_s22, %s2111_s8  ;;  %p2117_p5 = scmp.lt.s32.totalorder %s2111_s8, %s2111_s8 }
   0xf   :  { %p2118_p6 = por %p2117_p5, %p2116_p4 }
  0x11   :  { %p2119_p7 = pnand %p2118_p6, %p2112_p3 }
  0x13   :  { %2122 = shalt.err (!%p2119_p7)
}
  0x14   :  { %s2245_s9 = smov 128   ;;  %s2246_s10 = smov 8  }
  0x15   :  { %40 = dma.hbm_to_vmem [thread:$0]  %s2586_s1, 512, %s35_s22, [#allocation6], %s2245_s9, %s2245_s9, %s2246_s10  }
  0x16   :  { %s2123_s15 = scalar_lea.hbm %s2585_s0, 256 }
  0x17   :  { %p2124_p8 = scmp.ne.s32.totalorder %s2585_s0, %s2123_s15  ;;  %p2127_p9 = scmp.lt.u32.totalorder %s2123_s15, %s2585_s0 }
  0x19   :  { %p2129_p10 = pnand %p2127_p9, %p2124_p8 }
  0x1b   :  { %2132 = shalt.err (!%p2129_p10)
}
  0x1c   :  { %s2133_s20 = scalar_lea.vmem %s2302_s24, 256  ;;  %p2138_p12 = scmp.lt.s32.totalorder %s2302_s24, %s2302_s24 }
  0x1d   :  { %p2134_p11 = scmp.ne.s32.totalorder %s2302_s24, %s2133_s20  ;;  %p2139_p13 = scmp.lt.s32.totalorder %s2133_s20, %s2133_s20 }
  0x1f   :  { %p2140_p0 = por %p2139_p13, %p2138_p12 }
  0x21   :  { %p2141_p1 = pnand %p2140_p0, %p2134_p11 }
  0x23   :  { %2144 = shalt.err (!%p2141_p1)
}
  0x24   :  { %28 = dma.hbm_to_vmem [thread:$0]  %s2585_s0, 256, %s2302_s24, [#allocation3], %s2245_s9, %s2245_s9, %s2246_s10  }
  0x25   :  { %s2247_s22 = smov [#allocation7]   ;;  %s2248_s25 = smov [#allocation8]  }
  0x26   :  { %s46_s23 = sshll.u32 %s2247_s22, 4  ;;  %s58_s26 = sshll.u32 %s2248_s25, 4  ;;  %s47_s23 = int_to_ptr.vmem [resolvable:$true] %s46_s23  ;;  %s2339_s26 = int_to_ptr.vmem [resolvable:$true] %s58_s26 }
  0x27   :  { %s2145_s29 = scalar_lea.hbm %s2587_s2, 256 }
  0x28   :  { %p2146_p2 = scmp.ne.s32.totalorder %s2587_s2, %s2145_s29  ;;  %p2149_p3 = scmp.lt.u32.totalorder %s2145_s29, %s2587_s2 }
  0x2a   :  { %p2151_p4 = pnand %p2149_p3, %p2146_p2 }
  0x2c   :  { %2154 = shalt.err (!%p2151_p4)
}
  0x2d   :  { %s2155_s0 = scalar_lea.vmem %s47_s23, 256  ;;  %p2160_p6 = scmp.lt.s32.totalorder %s47_s23, %s47_s23 }
  0x2e   :  { %p2156_p5 = scmp.ne.s32.totalorder %s47_s23, %s2155_s0  ;;  %p2161_p7 = scmp.lt.s32.totalorder %s2155_s0, %s2155_s0 }
  0x30   :  { %p2162_p8 = por %p2161_p7, %p2160_p6 }
  0x32   :  { %p2163_p9 = pnand %p2162_p8, %p2156_p5 }
  0x34   :  { %2166 = shalt.err (!%p2163_p9)
}
  0x35   :  { %52 = dma.hbm_to_vmem [thread:$0]  %s2587_s2, 256, %s47_s23, [#allocation6], %s2245_s9, %s2245_s9, %s2246_s10  }
  0x36   :  { %s2167_s15 = scalar_lea.hbm %s2588_s3, 512 }
  0x37   :  { %p2168_p10 = scmp.ne.s32.totalorder %s2588_s3, %s2167_s15  ;;  %p2171_p11 = scmp.lt.u32.totalorder %s2167_s15, %s2588_s3 }
  0x39   :  { %p2173_p12 = pnand %p2171_p11, %p2168_p10 }
  0x3b   :  { %2176 = shalt.err (!%p2173_p12)
}
  0x3c   :  { %s2177_s20 = scalar_lea.vmem %s2339_s26, 512  ;;  %p2182_p0 = scmp.lt.s32.totalorder %s2339_s26, %s2339_s26 }
  0x3d   :  { %p2178_p13 = scmp.ne.s32.totalorder %s2339_s26, %s2177_s20  ;;  %p2183_p1 = scmp.lt.s32.totalorder %s2177_s20, %s2177_s20 }
  0x3f   :  { %p2184_p2 = por %p2183_p1, %p2182_p0 }
  0x41   :  { %p2185_p3 = pnand %p2184_p2, %p2178_p13 }
  0x43   :  { %2188 = shalt.err (!%p2185_p3)
}
  0x44   :  { %64 = dma.hbm_to_vmem [thread:$0]  %s2588_s3, 512, %s2339_s26, [#allocation9], %s2245_s9, %s2245_s9, %s2246_s10  }
  0x45   :  { %2233 = dma.done.wait [#allocation3], 256  }
  0x46   :  { %2234 = vsyncadd [#allocation3], 4294967040 }
  0x47   :  { %2235 = dma.done.wait [#allocation6], 768  }
  0x48   :  { %2236 = vsyncadd [#allocation6], 4294966528 }
  0x49   :  { %2237 = dma.done.wait [#allocation9], 512  }
  0x4a   :  { %2238 = vsyncadd [#allocation9], 4294966784  ;;  %vm96_vm0 = vcmask 261120   ;;  %v85_v0 = vld [vmem:[#allocation8] sm:$0xff]  ;;  %v86_v1 = vld [vmem:[#allocation8 + $0x8] sm:$0xff]  ;;  %v2249_v14 = vmov 0.0|0.0  }
  0x4b   :  { %v87_v2 = vld [vmem:[#allocation8 + $0x10] sm:$0xff]  ;;  %v1901_v3 = vpack.c.bf16 %v86_v1, %v85_v0  ;;  %v88_v4 = vld [vmem:[#allocation8 + $0x18] sm:$0xff]  ;;  %v79_v5 = vld [vmem:[#allocation2] sm:$0xff]  ;;  %1909 = vmatprep.subr.bf16.mxu1 %v2249_v14  ;;  %vm2250_vm1 = vmmov 0   ;;  %v2251_v19 = vmov 0.0   ;;  %vm220_vm2 = vcmask 64512  }
  0x4c   :  { %v1905_v6 = vpack.c.bf16 %v88_v4, %v87_v2  ;;  %1780 = vmatprep.mubr.msk.f32.mxu0 %vm96_vm0, %v79_v5  ;;  %v80_v7 = vld [vmem:[#allocation2 + $0x8] sm:$0xff]  ;;  %v81_v8 = vld [vmem:[#allocation5] sm:$0xff]  ;;  %v82_v9 = vld [vmem:[#allocation5 + $0x8] sm:$0xff]  ;;  %1793 = vmatprep.mubr.msk.f32.mxu1 %vm2250_vm1, %v2251_v19  ;;  %vm381_vm4 = vcmask 130048   ;;  %s2253_s22 = smov 64   ;;  %s2254_s23 = smov 88  }
  0x4d   :  { %1902 = vmatprep.subr.bf16.mxu0 %v1901_v3  ;;  %v83_v10 = vld [vmem:[#allocation5 + $0x10] sm:$0xff]  ;;  %v84_v11 = vld [vmem:[#allocation5 + $0x18] sm:$0xff]  ;;  %vm2399_vm3 = vmpackc.low %vm220_vm2, %vm220_vm2  ;;  %s2255_s25 = smov 120   ;;  %s2256_s26 = smov 56   ;;  %vm921_vm5 = vcmask 130112   ;;  %vm1279_vm6 = vcmask 195712  }
  0x4e   :  { %1904 = vmatpush3.bf16.msra.mxu0 %v1901_v3  ;;  %v1675_v12 = vld [vmem:[%s2589_s4] ss:$0 sm:$0xff]  ;;  %s2252_s4 = smov 96   ;;  %v2421_v40 = vld [vmem:[#allocation7] sm:$0xff]  ;;  %v2425_v45 = vld [vmem:[#allocation7 + $0x8] sm:$0xff]  ;;  %s2257_s27 = smov 80  }
  0x4f   :  { %1906 = vmatprep.subr.bf16.mxu0 %v1905_v6  ;;  %s2258_s28 = smov 112   ;;  %s2259_s29 = smov 48  }
  0x50   :  { %s2260_s30 = smov 72   ;;  %s2261_s7 = smov 104  }
  0x51   :  { %s2262_s8 = smov 40   ;;  %s2263_s11 = smov 16  }
  0x52   :  { %1908 = vmatpush3.bf16.msra.mxu0 %v1905_v6  ;;  %s2264_s0 = smov [#allocation11]   ;;  %s2265_s12 = smov 24  }
  0x53   :  { %1917 = vmatprep.subr.bf16.mxu0 %v2249_v14  ;;  %s1657_s24 = sshll.u32 %s2264_s0, 4  ;;  %s1658_s24 = int_to_ptr.vmem [resolvable:$true] %s1657_s24 }
  0x54   :  { %s2189_s13 = scalar_lea.vmem %s1658_s24, 1024  ;;  %p2194_p5 = scmp.lt.s32.totalorder %s1658_s24, %s1658_s24 }
  0x55   :  { %1781 = vmatmul.mubr.msk.f32.vlgmr.msra.gmra.mrb[0].mxu0 %vm96_vm0, %v80_v7  ;;  %p2190_p4 = scmp.ne.s32.totalorder %s1658_s24, %s2189_s13  ;;  %p2195_p6 = scmp.lt.s32.totalorder %s2189_s13, %s2189_s13 }
  0x56   :  { %1783 = vmatprep.mubr.msk.f32.mxu0 %vm96_vm0, %v81_v8 }
  0x57   :  { %p2196_p7 = por %p2195_p6, %p2194_p5 }
  0x59   :  { %1784 = vmatmul.mubr.msk.f32.gmra.mrb[2].mxu0 %vm96_vm0, %v82_v9  ;;  %p2197_p8 = pnand %p2196_p7, %p2190_p4 }
  0x5a   :  { %1786 = vmatprep.mubr.msk.f32.mxu0 %vm96_vm0, %v83_v10 }
  0x5d   :  { %1787 = vmatmul.mubr.msk.f32.gmra.mrb[4].mxu0 %vm96_vm0, %v84_v11 }
  0x5e   :  { %1807 = vmatprep.mubr.msk.f32.mxu0 %vm2250_vm1, %v2251_v19 }
 0x128   :  { %v1782_v13 = vpop.f32.mrb[0].mxu0 }
 0x129   :  { %v187_v15 = vadd.f32 %v1782_v13, %v1675_v12  ;;  %v181_v16 = vpop.f32.mrb[1].mxu0 }
 0x12a   :  { %v182_v17 = vadd.f32 %v1675_v12, %v181_v16 }
 0x12b   :  { %v2415_v39 = vmul.f32 0.35355338, %v187_v15 }
 0x12c   :  { %v1785_v18 = vpop.f32.mrb[2].mxu0  ;;  %v2406_v38 = vmul.f32 0.35355338, %v182_v17 }
 0x12d   :  { %v197_v20 = vadd.f32 %v1785_v18, %v1675_v12  ;;  %v191_v21 = vpop.f32.mrb[3].mxu0 }
 0x12e   :  { %v192_v22 = vadd.f32 %v1675_v12, %v191_v21 }
 0x130   :  { %v2391_v23 = vpack.i.bf16 %v197_v20, %v192_v22  ;;  %v1788_v24 = vpop.f32.mrb[4].mxu0 }
 0x131   :  { %v207_v25 = vadd.f32 %v1788_v24, %v1675_v12  ;;  %v201_v26 = vpop.f32.mrb[5].mxu0 }
 0x132   :  { %1990 = vrot.lane.b32.xlu0 %v2391_v23, %s2252_s4  ;;  %v202_v27 = vadd.f32 %v1675_v12, %v201_v26 }
 0x134   :  { %v2394_v28 = vpack.i.bf16 %v207_v25, %v202_v27 }
 0x136   :  { %1995 = vrot.lane.b32.xlu0 %v2394_v28, %s2252_s4 }
 0x1a4   :  { %v1991_v29 = vpop.permute.xlu0 %1990 }
 0x1a5   :  { %v1993_v30 = vunpack.i.h.bf16 %v1991_v29  ;;  %v1992_v31 = vunpack.i.l.bf16 %v1991_v29 }
 0x1a7   :  { %v1910_v33 = vpack.c.bf16 %v1993_v30, %v1992_v31 }
 0x1a8   :  { %v1996_v34 = vpop.permute.xlu0 %1995 }
 0x1a9   :  { %1912 = vmatpush3.bf16.xpose.msk.msra.mxu1 %vm2399_vm3, %v1910_v33  ;;  %v1998_v35 = vunpack.i.h.bf16 %v1996_v34  ;;  %v1997_v36 = vunpack.i.l.bf16 %v1996_v34 }
 0x1aa   :  { %1913 = vmatprep.subr.bf16.mxu1 %v2249_v14 }
 0x1ab   :  { %v1914_v37 = vpack.c.bf16 %v1998_v35, %v1997_v36 }
 0x1b0   :  { %1794 = vmatmul.mubr.msk.f32.vlgmr.msra.gmra.mrb[0].mxu1 %vm220_vm2, %v2406_v38 }
 0x1b1   :  { %1916 = vmatpush3.bf16.xpose.msk.msra.mxu1 %vm2399_vm3, %v1914_v37  ;;  %1800 = vmatprep.mubr.msk.f32.mxu1 %vm2250_vm1, %v2251_v19 }
 0x1b2   :  { %1920 = vmatprep.subr.bf16.mxu1 %v2249_v14 }
 0x1b8   :  { %1801 = vmatmul.mubr.msk.f32.vlgmr.msra.gmra.mrb[2].mxu1 %vm220_vm2, %v2415_v39 }
 0x1b9   :  { %1814 = vmatprep.mubr.msk.f32.mxu1 %vm2250_vm1, %v2251_v19 }
 0x283   :  { %v294_v41 = vpop.f32.mrb[0].mxu1 }
 0x284   :  { %v295_v42 = vadd.f32 %v294_v41, %v2421_v40  ;;  %v1795_v43 = vpop.f32.mrb[1].mxu1 }
 0x286   :  { %v382_v44 = vsel %vm381_vm4, %v295_v42, -inf }
 0x287   :  { %383 = vmax.xlane.f32.xlu1 %v382_v44 }
 0x28b   :  { %v377_v46 = vpop.f32.mrb[2].mxu1 }
 0x28c   :  { %v378_v47 = vadd.f32 %v377_v46, %v2425_v45  ;;  %v1802_v48 = vpop.f32.mrb[3].mxu1 }
 0x28e   :  { %v385_v49 = vsel %vm381_vm4, %v378_v47, -inf }
 0x28f   :  { %386 = vmax.xlane.f32.xlu1 %v385_v49 }
 0x2a0   :  { %2000 = vrot.lane.b32.xlu1 %v2391_v23, %s2253_s22 }
 0x2a4   :  { %2005 = vrot.lane.b32.xlu1 %v2394_v28, %s2253_s22 }
 0x2a8   :  { %2010 = vrot.lane.b32.xlu1 %v2391_v23, %s2254_s23 }
 0x2ac   :  { %2015 = vrot.lane.b32.xlu1 %v2394_v28, %s2254_s23 }
 0x314   :  { %v384_v50 = vpop.xlane.xlu1 %383 }
 0x315   :  { %v388_v51 = vsub.f32 %v295_v42, %v384_v50 }
 0x317   :  { %v390_v52 = vmul.f32 1.442695, %v388_v51 }
 0x319   :  { %2069 = vpow2.f32 %v390_v52 }
 0x31c   :  { %v387_v53 = vpop.xlane.xlu1 %386 }
 0x31d   :  { %v389_v54 = vsub.f32 %v378_v47, %v387_v53 }
 0x31f   :  { %v392_v55 = vmul.f32 1.442695, %v389_v54 }
 0x320   :  { %v2001_v56 = vpop.permute.xlu1 %2000 }
 0x321   :  { %2071 = vpow2.f32 %v392_v55  ;;  %v2003_v57 = vunpack.i.h.bf16 %v2001_v56  ;;  %v2002_v58 = vunpack.i.l.bf16 %v2001_v56 }
 0x323   :  { %v2070_v59 = vpop.eup %2069  ;;  %v1918_v60 = vpack.c.bf16 %v2003_v57, %v2002_v58 }
 0x324   :  { %v2006_v61 = vpop.permute.xlu1 %2005  ;;  %v394_v62 = vsel %vm381_vm4, %v2070_v59, 0.0 }
 0x325   :  { %v2008_v63 = vunpack.i.h.bf16 %v2006_v61  ;;  %v2007_v0 = vunpack.i.l.bf16 %v2006_v61  ;;  %395 = vadd.xlane.f32.xlu0 %v394_v62  ;;  %1919 = vmatpush3.bf16.msra.mxu0 %v1918_v60 }
 0x326   :  { %1923 = vmatprep.subr.bf16.mxu0 %v2249_v14 }
 0x327   :  { %v1921_v1 = vpack.c.bf16 %v2008_v63, %v2007_v0 }
 0x328   :  { %v2011_v4 = vpop.permute.xlu1 %2010 }
 0x329   :  { %1922 = vmatpush3.bf16.msra.mxu1 %v1921_v1  ;;  %v2013_v8 = vunpack.i.h.bf16 %v2011_v4  ;;  %v2012_v9 = vunpack.i.l.bf16 %v2011_v4 }
 0x32a   :  { %1927 = vmatprep.subr.bf16.mxu1 %v2249_v14 }
 0x32b   :  { %v2072_v2 = vpop.eup %2071  ;;  %v1924_v12 = vpack.c.bf16 %v2013_v8, %v2012_v9 }
 0x32c   :  { %v397_v3 = vsel %vm381_vm4, %v2072_v2, 0.0  ;;  %v2016_v6 = vpop.permute.xlu1 %2015 }
 0x32d   :  { %398 = vadd.xlane.f32.xlu1 %v397_v3  ;;  %v2018_v13 = vunpack.i.h.bf16 %v2016_v6  ;;  %v2017_v15 = vunpack.i.l.bf16 %v2016_v6 }
 0x32f   :  { %v1928_v18 = vpack.c.bf16 %v2018_v13, %v2017_v15 }
 0x33b   :  { %566 = vrot.lane.b32.xlu0 %v2406_v38, %s2255_s25 }
 0x33e   :  { %648 = vrot.lane.b32.xlu1 %v2415_v39, %s2255_s25 }
 0x3b2   :  { %v396_v5 = vpop.xlane.xlu0 %395 }
 0x3b3   :  { %2073 = vrcp.f32 %v396_v5 }
 0x3b6   :  { %v567_v20 = vpop.permute.xlu0 %566 }
 0x3ba   :  { %v399_v7 = vpop.xlane.xlu1 %398 }
 0x3bb   :  { %2075 = vrcp.f32 %v399_v7 }
 0x3bd   :  { %v2074_v10 = vpop.eup %2073 }
 0x3be   :  { %v401_v11 = vmul.f32 %v2074_v10, %v2070_v59  ;;  %v649_v21 = vpop.permute.xlu1 %648 }
 0x3c0   :  { %404 = vst.msk [vmem:[#allocation11] sm:$0xff] %vm381_vm4, %v401_v11  ;;  %1808 = vmatmul.mubr.msk.f32.vlgmr.msra.gmra.mrb[6].mxu0 %vm381_vm4, %v401_v11 }
 0x3c1   :  { %1926 = vmatpush3.bf16.xpose.msk.msra.mxu0 %vm2399_vm3, %v1924_v12  ;;  %1821 = vmatprep.mubr.msk.f32.mxu0 %vm2250_vm1, %v2251_v19 }
 0x3c2   :  { %1931 = vmatprep.subr.bf16.mxu0 %v2249_v14 }
 0x3c5   :  { %v2076_v16 = vpop.eup %2075 }
 0x3c6   :  { %v403_v17 = vmul.f32 %v2076_v16, %v2072_v2 }
 0x3c8   :  { %405 = vst.msk [vmem:[#allocation11 + $0x20] sm:$0xff] %vm381_vm4, %v403_v17  ;;  %1822 = vmatmul.mubr.msk.f32.vlgmr.msra.gmra.mrb[8].mxu0 %vm220_vm2, %v567_v20  ;;  %1815 = vmatmul.mubr.msk.f32.vlgmr.msra.gmra.mrb[4].mxu1 %vm381_vm4, %v403_v17 }
 0x3c9   :  { %1930 = vmatpush3.bf16.xpose.msk.msra.mxu1 %vm2399_vm3, %v1928_v18  ;;  %1828 = vmatprep.mubr.msk.f32.mxu1 %vm2250_vm1, %v2251_v19 }
 0x3ca   :  { %1934 = vmatprep.subr.bf16.mxu1 %v2249_v14  ;;  %1835 = vmatprep.mubr.msk.f32.mxu0 %vm2250_vm1, %v2251_v19 }
 0x3d0   :  { %1829 = vmatmul.mubr.msk.f32.vlgmr.msra.gmra.mrb[6].mxu1 %vm220_vm2, %v649_v21 }
 0x3d1   :  { %1842 = vmatprep.mubr.msk.f32.mxu1 %vm2250_vm1, %v2251_v19 }
 0x493   :  { %v481_v22 = vpop.f32.mrb[6].mxu0 }
 0x494   :  { %564 = vst.msk [vmem:[#allocation10] sm:$0xff] %vm220_vm2, %v481_v22  ;;  %v1809_v24 = vpop.f32.mrb[7].mxu0 }
 0x49b   :  { %v644_v25 = vpop.f32.mrb[8].mxu0  ;;  %v560_v26 = vpop.f32.mrb[4].mxu1 }
 0x49c   :  { %v645_v27 = vadd.f32 %v644_v25, %v2421_v40  ;;  %565 = vst.msk [vmem:[#allocation10 + $0x8] sm:$0xff] %vm220_vm2, %v560_v26  ;;  %v1823_v29 = vpop.f32.mrb[9].mxu0  ;;  %v1816_v30 = vpop.f32.mrb[5].mxu1 }
 0x49e   :  { %v730_v31 = vsel %vm381_vm4, %v645_v27, -inf }
 0x49f   :  { %731 = vmax.xlane.f32.xlu1 %v730_v31 }
 0x4a3   :  { %v726_v33 = vpop.f32.mrb[6].mxu1 }
 0x4a4   :  { %v727_v34 = vadd.f32 %v726_v33, %v2425_v45  ;;  %v1830_v35 = vpop.f32.mrb[7].mxu1 }
 0x4a6   :  { %v733_v36 = vsel %vm381_vm4, %v727_v34, -inf }
 0x4a7   :  { %734 = vmax.xlane.f32.xlu0 %v733_v36 }
 0x4b0   :  { %2020 = vrot.lane.b32.xlu1 %v2391_v23, %s2256_s26 }
 0x4b4   :  { %2030 = vrot.lane.b32.xlu1 %v2391_v23, %s2257_s27 }
 0x4b8   :  { %2035 = vrot.lane.b32.xlu1 %v2394_v28, %s2257_s27 }
 0x4bd   :  { %2025 = vrot.lane.b32.xlu0 %v2394_v28, %s2256_s26 }
 0x4c1   :  { %924 = vrot.lane.b32.xlu0 %v2406_v38, %s2258_s28 }
 0x52c   :  { %v732_v37 = vpop.xlane.xlu1 %731 }
 0x52d   :  { %v736_v41 = vsub.f32 %v645_v27, %v732_v37 }
 0x52f   :  { %v738_v42 = vmul.f32 1.442695, %v736_v41 }
 0x530   :  { %v2021_v43 = vpop.permute.xlu1 %2020 }
 0x531   :  { %2077 = vpow2.f32 %v738_v42  ;;  %v2023_v44 = vunpack.i.h.bf16 %v2021_v43  ;;  %v2022_v46 = vunpack.i.l.bf16 %v2021_v43 }
 0x533   :  { %v1932_v47 = vpack.c.bf16 %v2023_v44, %v2022_v46 }
 0x534   :  { %v735_v48 = vpop.xlane.xlu0 %734  ;;  %v2031_v59 = vpop.permute.xlu1 %2030 }
 0x535   :  { %v737_v49 = vsub.f32 %v727_v34, %v735_v48  ;;  %1933 = vmatpush3.bf16.msra.mxu0 %v1932_v47  ;;  %v2033_v63 = vunpack.i.h.bf16 %v2031_v59  ;;  %v2032_v0 = vunpack.i.l.bf16 %v2031_v59 }
 0x536   :  { %1937 = vmatprep.subr.bf16.mxu0 %v2249_v14 }
 0x537   :  { %v740_v50 = vmul.f32 1.442695, %v737_v49  ;;  %v1938_v3 = vpack.c.bf16 %v2033_v63, %v2032_v0 }
 0x538   :  { %v2026_v51 = vpop.permute.xlu0 %2025  ;;  %v2036_v60 = vpop.permute.xlu1 %2035 }
 0x539   :  { %2079 = vpow2.f32 %v740_v50  ;;  %v2028_v52 = vunpack.i.h.bf16 %v2026_v51  ;;  %v2027_v53 = vunpack.i.l.bf16 %v2026_v51  ;;  %v2038_v4 = vunpack.i.h.bf16 %v2036_v60 }
 0x53a   :  { %v2037_v5 = vunpack.i.l.bf16 %v2036_v60 }
 0x53b   :  { %v2078_v54 = vpop.eup %2077  ;;  %v1935_v55 = vpack.c.bf16 %v2028_v52, %v2027_v53 }
 0x53c   :  { %v742_v56 = vsel %vm381_vm4, %v2078_v54, 0.0  ;;  %v1942_v8 = vpack.c.bf16 %v2038_v4, %v2037_v5  ;;  %v925_v9 = vpop.permute.xlu0 %924 }
 0x53d   :  { %743 = vadd.xlane.f32.xlu1 %v742_v56  ;;  %1936 = vmatpush3.bf16.msra.mxu1 %v1935_v55 }
 0x53e   :  { %1941 = vmatprep.subr.bf16.mxu1 %v2249_v14 }
 0x543   :  { %v2080_v57 = vpop.eup %2079 }
 0x544   :  { %v745_v58 = vsel %vm381_vm4, %v2080_v57, 0.0 }
 0x545   :  { %746 = vadd.xlane.f32.xlu1 %v745_v58 }
 0x556   :  { %1006 = vrot.lane.b32.xlu1 %v2415_v39, %s2258_s28 }
 0x5ca   :  { %v744_v61 = vpop.xlane.xlu1 %743 }
 0x5cb   :  { %2081 = vrcp.f32 %v744_v61 }
 0x5d2   :  { %v747_v62 = vpop.xlane.xlu1 %746 }
 0x5d3   :  { %2083 = vrcp.f32 %v747_v62 }
 0x5d5   :  { %v2082_v1 = vpop.eup %2081 }
 0x5d6   :  { %v749_v2 = vmul.f32 %v2082_v1, %v2078_v54  ;;  %v1007_v10 = vpop.permute.xlu1 %1006 }
 0x5d8   :  { %753 = vst.msk [vmem:[#allocation11 + $0x8] sm:$0xff] %vm381_vm4, %v749_v2  ;;  %1836 = vmatmul.mubr.msk.f32.vlgmr.msra.gmra.mrb[10].mxu0 %vm381_vm4, %v749_v2 }
 0x5d9   :  { %1940 = vmatpush3.bf16.xpose.msk.msra.mxu0 %vm2399_vm3, %v1938_v3  ;;  %1849 = vmatprep.mubr.msk.f32.mxu0 %vm2250_vm1, %v2251_v19 }
 0x5da   :  { %1945 = vmatprep.subr.bf16.mxu0 %v2249_v14 }
 0x5dd   :  { %v2084_v6 = vpop.eup %2083 }
 0x5de   :  { %v751_v7 = vmul.f32 %v2084_v6, %v2080_v57 }
 0x5e0   :  { %754 = vst.msk [vmem:[#allocation11 + $0x28] sm:$0xff] %vm381_vm4, %v751_v7  ;;  %1850 = vmatmul.mubr.msk.f32.vlgmr.msra.gmra.mrb[12].mxu0 %vm220_vm2, %v925_v9  ;;  %1843 = vmatmul.mubr.msk.f32.vlgmr.msra.gmra.mrb[8].mxu1 %vm381_vm4, %v751_v7 }
 0x5e1   :  { %1944 = vmatpush3.bf16.xpose.msk.msra.mxu1 %vm2399_vm3, %v1942_v8  ;;  %1856 = vmatprep.mubr.msk.f32.mxu1 %vm2250_vm1, %v2251_v19 }
 0x5e2   :  { %1863 = vmatprep.mubr.msk.f32.mxu0 %vm2250_vm1, %v2251_v19  ;;  %1948 = vmatprep.subr.bf16.mxu1 %v2249_v14 }
 0x5e8   :  { %1857 = vmatmul.mubr.msk.f32.vlgmr.msra.gmra.mrb[10].mxu1 %vm220_vm2, %v1007_v10 }
 0x5e9   :  { %1870 = vmatprep.mubr.msk.f32.mxu1 %vm2250_vm1, %v2251_v19 }
 0x6ab   :  { %v2495_v11 = vpop.f32.mrb[10].mxu0 }
 0x6ac   :  { %v1837_v12 = vpop.f32.mrb[11].mxu0 }
 0x6b3   :  { %v1002_v13 = vpop.f32.mrb[12].mxu0  ;;  %v2497_v15 = vpop.f32.mrb[8].mxu1 }
 0x6b4   :  { %v1003_v16 = vadd.f32 %v1002_v13, %v2421_v40  ;;  %v1851_v17 = vpop.f32.mrb[13].mxu0  ;;  %v1844_v18 = vpop.f32.mrb[9].mxu1 }
 0x6b6   :  { %v1088_v20 = vsel %vm381_vm4, %v1003_v16, -inf }
 0x6b7   :  { %1089 = vmax.xlane.f32.xlu0 %v1088_v20 }
 0x6bb   :  { %v1084_v21 = vpop.f32.mrb[10].mxu1 }
 0x6bc   :  { %v1085_v22 = vadd.f32 %v1084_v21, %v2425_v45  ;;  %v1858_v24 = vpop.f32.mrb[11].mxu1 }
 0x6be   :  { %v1091_v25 = vsel %vm381_vm4, %v1085_v22, -inf }
 0x6bf   :  { %1092 = vmax.xlane.f32.xlu1 %v1091_v25 }
 0x6d0   :  { %2040 = vrot.lane.b32.xlu1 %v2391_v23, %s2259_s29 }
 0x6d4   :  { %2050 = vrot.lane.b32.xlu1 %v2391_v23, %s2260_s30 }
 0x6d8   :  { %2055 = vrot.lane.b32.xlu1 %v2394_v28, %s2260_s30 }
 0x6dc   :  { %1364 = vrot.lane.b32.xlu1 %v2415_v39, %s2261_s7 }
 0x744   :  { %v1090_v26 = vpop.xlane.xlu0 %1089 }
 0x745   :  { %v1094_v27 = vsub.f32 %v1003_v16, %v1090_v26 }
 0x747   :  { %v1096_v29 = vmul.f32 1.442695, %v1094_v27 }
 0x749   :  { %2085 = vpow2.f32 %v1096_v29 }
 0x74c   :  { %v1093_v30 = vpop.xlane.xlu1 %1092 }
 0x74d   :  { %v1095_v31 = vsub.f32 %v1085_v22, %v1093_v30 }
 0x74f   :  { %v1098_v33 = vmul.f32 1.442695, %v1095_v31 }
 0x750   :  { %v2041_v34 = vpop.permute.xlu1 %2040 }
 0x751   :  { %2087 = vpow2.f32 %v1098_v33  ;;  %v2043_v35 = vunpack.i.h.bf16 %v2041_v34  ;;  %v2042_v36 = vunpack.i.l.bf16 %v2041_v34 }
 0x753   :  { %v2086_v37 = vpop.eup %2085  ;;  %v1946_v41 = vpack.c.bf16 %v2043_v35, %v2042_v36 }
 0x754   :  { %v1100_v42 = vsel %vm381_vm4, %v2086_v37, 0.0  ;;  %v2051_v46 = vpop.permute.xlu1 %2050 }
 0x755   :  { %1101 = vadd.xlane.f32.xlu0 %v1100_v42  ;;  %1947 = vmatpush3.bf16.msra.mxu0 %v1946_v41  ;;  %v2053_v48 = vunpack.i.h.bf16 %v2051_v46  ;;  %v2052_v49 = vunpack.i.l.bf16 %v2051_v46 }
 0x756   :  { %1951 = vmatprep.subr.bf16.mxu0 %v2249_v14 }
 0x757   :  { %v1952_v53 = vpack.c.bf16 %v2053_v48, %v2052_v49 }
 0x75b   :  { %v2088_v39 = vpop.eup %2087 }
 0x75c   :  { %v1103_v43 = vsel %vm381_vm4, %v2088_v39, 0.0 }
 0x75d   :  { %1104 = vadd.xlane.f32.xlu0 %v1103_v43 }
 0x773   :  { %2045 = vrot.lane.b32.xlu0 %v2394_v28, %s2259_s29 }
 0x777   :  { %1282 = vrot.lane.b32.xlu0 %v2406_v38, %s2261_s7  ;;  %v2056_v38 = vpop.permute.xlu1 %2055 }
 0x778   :  { %v2058_v58 = vunpack.i.h.bf16 %v2056_v38  ;;  %v2057_v59 = vunpack.i.l.bf16 %v2056_v38 }
 0x77a   :  { %v1956_v62 = vpack.c.bf16 %v2058_v58, %v2057_v59 }
 0x77b   :  { %v1365_v63 = vpop.permute.xlu1 %1364 }
 0x7e2   :  { %v1102_v44 = vpop.xlane.xlu0 %1101 }
 0x7e3   :  { %2089 = vrcp.f32 %v1102_v44 }
 0x7ea   :  { %v1105_v47 = vpop.xlane.xlu0 %1104 }
 0x7eb   :  { %2091 = vrcp.f32 %v1105_v47 }
 0x7ed   :  { %v2090_v50 = vpop.eup %2089 }
 0x7ee   :  { %v1107_v51 = vmul.f32 %v2090_v50, %v2086_v37  ;;  %v2046_v52 = vpop.permute.xlu0 %2045 }
 0x7ef   :  { %v2048_v54 = vunpack.i.h.bf16 %v2046_v52  ;;  %v2047_v55 = vunpack.i.l.bf16 %v2046_v52 }
 0x7f0   :  { %1111 = vst.msk [vmem:[#allocation11 + $0x10] sm:$0xff] %vm381_vm4, %v1107_v51  ;;  %1864 = vmatmul.mubr.msk.f32.vlgmr.msra.gmra.mrb[14].mxu0 %vm381_vm4, %v1107_v51 }
 0x7f1   :  { %v1949_v56 = vpack.c.bf16 %v2048_v54, %v2047_v55  ;;  %1954 = vmatpush3.bf16.xpose.msk.msra.mxu0 %vm2399_vm3, %v1952_v53  ;;  %1877 = vmatprep.mubr.msk.f32.mxu0 %vm2250_vm1, %v2251_v19 }
 0x7f2   :  { %1959 = vmatprep.subr.bf16.mxu0 %v2249_v14  ;;  %v1283_v61 = vpop.permute.xlu0 %1282 }
 0x7f3   :  { %1950 = vmatpush3.bf16.msra.mxu1 %v1949_v56 }
 0x7f4   :  { %1955 = vmatprep.subr.bf16.mxu1 %v2249_v14 }
 0x7f5   :  { %v2092_v57 = vpop.eup %2091 }
 0x7f6   :  { %v1109_v60 = vmul.f32 %v2092_v57, %v2088_v39 }
 0x7f8   :  { %1112 = vst.msk [vmem:[#allocation11 + $0x30] sm:$0xff] %vm381_vm4, %v1109_v60  ;;  %1878 = vmatmul.mubr.msk.f32.vlgmr.msra.gmra.mrb[16].mxu0 %vm220_vm2, %v1283_v61  ;;  %1871 = vmatmul.mubr.msk.f32.vlgmr.msra.gmra.mrb[12].mxu1 %vm381_vm4, %v1109_v60 }
 0x7f9   :  { %1884 = vmatprep.mubr.msk.f32.mxu1 %vm2250_vm1, %v2251_v19  ;;  %1891 = vmatprep.mubr.msk.f32.mxu0 %vm2250_vm1, %v2251_v19 }
 0x7fc   :  { %1958 = vmatpush3.bf16.xpose.msk.msra.mxu1 %vm2399_vm3, %v1956_v62 }
 0x7fd   :  { %1962 = vmatprep.subr.bf16.mxu1 %v2249_v14 }
 0x803   :  { %1885 = vmatmul.mubr.msk.f32.vlgmr.msra.gmra.mrb[14].mxu1 %vm220_vm2, %v1365_v63 }
 0x804   :  { %1898 = vmatprep.mubr.msk.f32.mxu1 %vm2250_vm1, %v2251_v19 }
 0x8c3   :  { %v1188_v0 = vpop.f32.mrb[14].mxu0 }
 0x8c4   :  { %v1865_v1 = vpop.f32.mrb[15].mxu0 }
 0x8cb   :  { %v1360_v2 = vpop.f32.mrb[16].mxu0  ;;  %v1267_v3 = vpop.f32.mrb[12].mxu1 }
 0x8cc   :  { %v1361_v4 = vadd.f32 %v1360_v2, %v2421_v40  ;;  %v1879_v5 = vpop.f32.mrb[17].mxu0  ;;  %v1872_v6 = vpop.f32.mrb[13].mxu1 }
 0x8ce   :  { %v1446_v7 = vsel %vm381_vm4, %v1361_v4, -inf }
 0x8cf   :  { %1447 = vmax.xlane.f32.xlu0 %v1446_v7 }
 0x8d6   :  { %v1442_v32 = vpop.f32.mrb[14].mxu1 }
 0x8d7   :  { %v1443_v14 = vadd.f32 %v1442_v32, %v2425_v45  ;;  %v1886_v8 = vpop.f32.mrb[15].mxu1 }
 0x8d9   :  { %v1449_v9 = vsel %vm381_vm4, %v1443_v14, -inf }
 0x8da   :  { %1450 = vmax.xlane.f32.xlu1 %v1449_v9 }
 0x8eb   :  { %2060 = vrot.lane.b32.xlu1 %v2391_v23, %s2262_s8 }
 0x8ef   :  { %915 = vrot.lane.b32.xlu1 %v2495_v11, %s2246_s10 }
 0x8f3   :  { %917 = vrot.lane.b32.xlu1 %v2497_v15, %s2246_s10 }
 0x8f7   :  { %1275 = vrot.lane.b32.xlu1 %v1267_v3, %s2263_s11 }
 0x95c   :  { %v1448_v19 = vpop.xlane.xlu0 %1447 }
 0x95d   :  { %v1452_v40 = vsub.f32 %v1361_v4, %v1448_v19 }
 0x95f   :  { %v1454_v45 = vmul.f32 1.442695, %v1452_v40 }
 0x961   :  { %2093 = vpow2.f32 %v1454_v45 }
 0x967   :  { %v1451_v10 = vpop.xlane.xlu1 %1450 }
 0x968   :  { %v1453_v12 = vsub.f32 %v1443_v14, %v1451_v10 }
 0x96a   :  { %v1456_v13 = vmul.f32 1.442695, %v1453_v12 }
 0x96b   :  { %v2094_v16 = vpop.eup %2093  ;;  %v2061_v17 = vpop.permute.xlu1 %2060 }
 0x96c   :  { %2095 = vpow2.f32 %v1456_v13  ;;  %v2063_v23 = vunpack.i.h.bf16 %v2061_v17  ;;  %v2062_v18 = vunpack.i.l.bf16 %v2061_v17  ;;  %v1458_v11 = vsel %vm381_vm4, %v2094_v16, 0.0 }
 0x96d   :  { %1459 = vadd.xlane.f32.xlu0 %v1458_v11 }
 0x96e   :  { %v1960_v15 = vpack.c.bf16 %v2063_v23, %v2062_v18 }
 0x96f   :  { %v916_v20 = vpop.permute.xlu1 %915 }
 0x970   :  { %922 = vst.msk [vmem:[#allocation10] sm:$0xff] %vm921_vm5, %v916_v20  ;;  %1961 = vmatpush3.bf16.msra.mxu0 %v1960_v15 }
 0x973   :  { %v918_v21 = vpop.permute.xlu1 %917 }
 0x974   :  { %923 = vst.msk [vmem:[#allocation10 + $0x8] sm:$0xff] %vm921_vm5, %v918_v21 }
 0x976   :  { %v2096_v22 = vpop.eup %2095 }
 0x977   :  { %v1276_v24 = vpop.permute.xlu1 %1275  ;;  %v1461_v25 = vsel %vm381_vm4, %v2096_v22, 0.0 }
 0x978   :  { %1281 = vst.msk [vmem:[#allocation10 + $0x8] sm:$0xff] %vm1279_vm6, %v1276_v24  ;;  %1462 = vadd.xlane.f32.xlu0 %v1461_v25 }
 0x98e   :  { %2065 = vrot.lane.b32.xlu0 %v2394_v28, %s2262_s8 }
 0x992   :  { %1273 = vrot.lane.b32.xlu0 %v1188_v0, %s2263_s11 }
 0x9fa   :  { %v1460_v26 = vpop.xlane.xlu0 %1459 }
 0x9fb   :  { %2097 = vrcp.f32 %v1460_v26 }
 0xa05   :  { %v2098_v27 = vpop.eup %2097  ;;  %v1463_v29 = vpop.xlane.xlu0 %1462 }
 0xa06   :  { %v1465_v30 = vmul.f32 %v2098_v27, %v2094_v16  ;;  %2099 = vrcp.f32 %v1463_v29 }
 0xa08   :  { %1469 = vst.msk [vmem:[#allocation11 + $0x18] sm:$0xff] %vm381_vm4, %v1465_v30  ;;  %1892 = vmatmul.mubr.msk.f32.vlgmr.msra.gmra.mrb[18].mxu0 %vm381_vm4, %v1465_v30 }
 0xa09   :  { %v2066_v31 = vpop.permute.xlu0 %2065 }
 0xa0a   :  { %v2068_v33 = vunpack.i.h.bf16 %v2066_v31  ;;  %v2067_v34 = vunpack.i.l.bf16 %v2066_v31 }
 0xa0c   :  { %v1963_v35 = vpack.c.bf16 %v2068_v33, %v2067_v34 }
 0xa0d   :  { %v1274_v36 = vpop.permute.xlu0 %1273 }
 0xa0e   :  { %1280 = vst.msk [vmem:[#allocation10] sm:$0xff] %vm1279_vm6, %v1274_v36  ;;  %1964 = vmatpush3.bf16.msra.mxu1 %v1963_v35 }
 0xa10   :  { %v2100_v28 = vpop.eup %2099 }
 0xa11   :  { %v1467_v37 = vmul.f32 %v2100_v28, %v2096_v22 }
 0xa13   :  { %1470 = vst.msk [vmem:[#allocation11 + $0x38] sm:$0xff] %vm381_vm4, %v1467_v37  ;;  %1899 = vmatmul.mubr.msk.f32.vlgmr.msra.gmra.mrb[16].mxu1 %vm381_vm4, %v1467_v37 }
 0xadb   :  { %v1546_v41 = vpop.f32.mrb[18].mxu0 }
 0xadc   :  { %1631 = vrot.lane.b32.xlu0 %v1546_v41, %s2265_s12  ;;  %v1893_v42 = vpop.f32.mrb[19].mxu0 }
 0xadd   :  { %2200 = shalt.err (!%p2197_p8)
}
 0xade   :  { %s2201_s16 = scalar_lea.hbm %s2591_s6, 1024 }
 0xadf   :  { %p2202_p9 = scmp.ne.s32.totalorder %s2591_s6, %s2201_s16  ;;  %p2205_p10 = scmp.lt.u32.totalorder %s2201_s16, %s2591_s6 }
 0xae1   :  { %p2207_p11 = pnand %p2205_p10, %p2202_p9 }
 0xae3   :  { %2210 = shalt.err (!%p2207_p11)
}
 0xae4   :  { %1663 = dma.vmem_to_hbm [thread:$0]  %s1658_s24, 1024, %s2591_s6, [#allocation12], %s2245_s9, %s2245_s9, %s2246_s10   ;;  %vm1637_vm7 = vcmask 261312  }
 0xae5   :  { %s2266_s3 = smov [#allocation10]  }
 0xae6   :  { %v1625_v39 = vpop.f32.mrb[16].mxu1  ;;  %s1645_s21 = sshll.u32 %s2266_s3, 4  ;;  %s1646_s21 = int_to_ptr.vmem [resolvable:$true] %s1645_s21 }
 0xae7   :  { %1633 = vrot.lane.b32.xlu1 %v1625_v39, %s2265_s12  ;;  %v1900_v43 = vpop.f32.mrb[17].mxu1  ;;  %s2211_s4 = scalar_lea.vmem %s1646_s21, 256  ;;  %p2216_p13 = scmp.lt.s32.totalorder %s1646_s21, %s1646_s21 }
 0xae8   :  { %p2212_p12 = scmp.ne.s32.totalorder %s1646_s21, %s2211_s4  ;;  %p2217_p0 = scmp.lt.s32.totalorder %s2211_s4, %s2211_s4 }
 0xaea   :  { %p2218_p1 = por %p2217_p0, %p2216_p13 }
 0xaec   :  { %p2219_p2 = pnand %p2218_p1, %p2212_p12 }
 0xb4e   :  { %v1632_v44 = vpop.permute.xlu0 %1631 }
 0xb4f   :  { %1638 = vst.msk [vmem:[#allocation10] sm:$0xff] %vm1637_vm7, %v1632_v44 }
 0xb59   :  { %v1634_v46 = vpop.permute.xlu1 %1633 }
 0xb5a   :  { %1639 = vst.msk [vmem:[#allocation10 + $0x8] sm:$0xff] %vm1637_vm7, %v1634_v46 }
 0xb5b   :  { %2222 = shalt.err (!%p2219_p2)
}
 0xb5c   :  { %s2223_s23 = scalar_lea.hbm %s2590_s5, 256 }
 0xb5d   :  { %p2224_p3 = scmp.ne.s32.totalorder %s2590_s5, %s2223_s23  ;;  %p2227_p4 = scmp.lt.u32.totalorder %s2223_s23, %s2590_s5 }
 0xb5f   :  { %p2229_p5 = pnand %p2227_p4, %p2224_p3 }
 0xb61   :  { %2232 = shalt.err (!%p2229_p5)
}
 0xb62   :  { %1651 = dma.vmem_to_hbm [thread:$0]  %s1646_s21, 256, %s2590_s5, [#allocation4], %s2245_s9, %s2245_s9, %s2246_s10  }
 0xb63   :  { %2239 = dma.done.wait [#allocation4], 256  }
 0xb64   :  { %2240 = vsyncadd [#allocation4], 4294967040 }
 0xb65   :  { %2241 = dma.done.wait [#allocation12], 1024  }
 0xb66   :  { %2242 = vsyncadd [#allocation12], 4294966272 }
 0xb67   :  { %1670 = vsyncpa [#allocation3], 1 }
 0xb68   :  { %1671 = vsyncpa [#allocation6], 1 }
 0xb69   :  { %1672 = vsyncpa [#allocation9], 1 }
 0xb6a   :  { %1673 = vsyncpa [#allocation4], 1 }
 0xb6b   :  { %1674 = vsyncpa [#allocation12], 1 }

</bundles_post_ra>
